<compile_context>
chip_gen: v7x
topology: tpu7x:2x2x1
jax: 0.10.0
libtpu: 0.0.40
codegen_flags: <defaults>
</compile_context>

<pallas_src>
import functools

import jax
import jax.numpy as jnp
from jax.experimental import pallas as pl
from jax.experimental.pallas import tpu as pltpu


def _round_up(x, m):
    return ((x + m - 1) // m) * m


def _decoder_kernel(obs_ref, lat_ref, w12_ref, w3_ref, b12_ref, b3_ref,
                    out_ref, x_scr, *, obs_cols, lat_cols, observation_dim,
                    k_pad, hidden_dim):
    tb = x_scr.shape[0]

    # Build the zero-padded fc1 input (PyTorch pad/concat semantics) in VMEM.
    # Pad-lane zero stores run every step (not only at program_id==0) so the
    # kernel is correct when the batch grid axis is split across cores; they
    # are skipped at trace time when the inputs already have full widths.
    if obs_cols < observation_dim:
        x_scr[:, obs_cols:observation_dim] = jnp.zeros(
            (tb, observation_dim - obs_cols), jnp.float32)
    if observation_dim + lat_cols < k_pad:
        x_scr[:, observation_dim + lat_cols:] = jnp.zeros(
            (tb, k_pad - observation_dim - lat_cols), jnp.float32)
    x_scr[:, 0:obs_cols] = obs_ref[...]
    x_scr[:, observation_dim:observation_dim + lat_cols] = lat_ref[...]
    x = x_scr[...].astype(jnp.bfloat16)

    # Packed weights: rows [0:k_pad] = W1 (zero-padded), rows [k_pad:] = W2.
    # k_pad is a multiple of 16 so both slices are tile-aligned views.
    w1 = w12_ref[0:k_pad, :]
    w2 = w12_ref[k_pad:k_pad + hidden_dim, :]
    b1 = b12_ref[0:1, :]
    b2 = b12_ref[1:2, :]

    # fc1 + ReLU (single MXU dot, f32 accumulation).
    h1 = jnp.dot(x, w1, preferred_element_type=jnp.float32) + b1
    h1 = jnp.maximum(h1, 0.0)

    # fc2 + ReLU.
    h2 = jnp.dot(h1.astype(jnp.bfloat16), w2,
                 preferred_element_type=jnp.float32) + b2
    h2 = jnp.maximum(h2, 0.0)

    # Action head (lane-padded to a multiple of 128) + softmax.  Padded lanes
    # have bias -1e30 so exp underflows to exactly 0 and the normalization of
    # the real lanes is untouched.
    logits = jnp.dot(h2.astype(jnp.bfloat16), w3_ref[...],
                     preferred_element_type=jnp.float32) + b3_ref[...]
    m = jnp.max(logits, axis=-1, keepdims=True)
    e = jnp.exp(logits - m)
    denom = jnp.sum(e, axis=-1, keepdims=True)
    out_ref[...] = (e / denom).astype(out_ref.dtype)   # exact division


@functools.partial(jax.jit,
                   static_argnames=("observation_dim", "latent_dim",
                                    "action_dim", "out_dtype", "trim_output"))
def decoder_forward(observation, latent, params, *, observation_dim,
                    latent_dim, action_dim, out_dtype=jnp.float32,
                    trim_output=True):
    """Fused DecoderNetwork.forward (discrete actions) as one pallas_call."""
    if observation.ndim == 1:
        observation = observation[None, :]
    if latent.ndim == 1:
        latent = latent[None, :]

    # Truncation handled by slicing here; padding handled inside the kernel by
    # the zero pad lanes of the fc1 input scratch (zeros contribute nothing).
    obs_cols = min(observation.shape[-1], observation_dim)
    lat_cols = min(latent.shape[-1], latent_dim)
    observation = observation[..., :obs_cols].astype(jnp.float32)
    latent = latent[..., :lat_cols].astype(jnp.float32)

    w12, w3, b12, b3 = params["w12"], params["w3"], params["b12"], params["b3"]
    B = observation.shape[0]
    hidden_dim = b12.shape[1]
    a_pad = w3.shape[1]
    k_pad = w12.shape[0] - hidden_dim

    # Batch tiling: one block for small B; otherwise >=2 blocks (both v7x TCs
    # get work via dimension_semantics=("parallel",)), tiles capped at 1024
    # rows to amortize per-step grid overhead without hitting vreg pressure.
    if B <= 64:
        tb = B
    else:
        tb = min(1024, _round_up(pl.cdiv(B, 2), 8))
    grid = (pl.cdiv(B, tb),)

    kernel = functools.partial(
        _decoder_kernel, obs_cols=obs_cols, lat_cols=lat_cols,
        observation_dim=observation_dim, k_pad=k_pad, hidden_dim=hidden_dim)

    out_itemsize = jnp.dtype(out_dtype).itemsize
    cost = pl.CostEstimate(
        flops=2 * B * (k_pad * hidden_dim + hidden_dim * hidden_dim
                       + hidden_dim * a_pad),
        transcendentals=B * a_pad,
        bytes_accessed=(B * (obs_cols + lat_cols) * 4
                        + B * a_pad * out_itemsize
                        + w12.size * 2 + w3.size * 2
                        + (b12.size + b3.size) * 4),
    )

    probs_padded = pl.pallas_call(
        kernel,
        out_shape=jax.ShapeDtypeStruct((B, a_pad), out_dtype),
        grid=grid,
        in_specs=[
            pl.BlockSpec((tb, obs_cols), lambda i: (i, 0)),
            pl.BlockSpec((tb, lat_cols), lambda i: (i, 0)),
            pl.BlockSpec(w12.shape, lambda i: (0, 0)),   # VMEM-resident weights
            pl.BlockSpec(w3.shape, lambda i: (0, 0)),
            pl.BlockSpec(b12.shape, lambda i: (0, 0)),
            pl.BlockSpec(b3.shape, lambda i: (0, 0)),
        ],
        out_specs=pl.BlockSpec((tb, a_pad), lambda i: (i, 0)),
        scratch_shapes=[pltpu.VMEM((tb, k_pad), jnp.float32)],
        compiler_params=pltpu.CompilerParams(dimension_semantics=("parallel",)),
        cost_estimate=cost,
    )(observation, latent, w12, w3, b12, b3)

    if trim_output:
        # Matches the PyTorch contract ([B, action_dim]).  Callers that can
        # consume the lane-padded block directly (padded lanes are exact 0)
        # should pass trim_output=False to skip this extra HBM pass.
        return probs_padded[:, :action_dim]
    return probs_padded


def init_params(key, observation_dim, latent_dim, hidden_dim, action_dim):
    """nn.Linear-style init (uniform +/- 1/sqrt(fan_in)), packed for the kernel."""
    input_dim = observation_dim + latent_dim
    k_pad = _round_up(input_dim, 16)                 # bf16 sublane alignment
    a_pad = _round_up(max(action_dim, 128), 128)     # lane-dense output
    ks = jax.random.split(key, 6)

    def linear(kw, kb, fan_in, fan_out):
        bound = float(fan_in) ** -0.5
        w = jax.random.uniform(kw, (fan_in, fan_out), jnp.float32, -bound, bound)
        b = jax.random.uniform(kb, (1, fan_out), jnp.float32, -bound, bound)
        return w, b

    w1, b1 = linear(ks[0], ks[1], input_dim, hidden_dim)
    w2, b2 = linear(ks[2], ks[3], hidden_dim, hidden_dim)
    w3, b3 = linear(ks[4], ks[5], hidden_dim, action_dim)

    # Packed / padded kernel params (done once; zero per-call repacking).
    w1p = jnp.zeros((k_pad, hidden_dim), jnp.float32).at[:input_dim].set(w1)
    w12 = jnp.concatenate([w1p, w2], axis=0).astype(jnp.bfloat16)
    b12 = jnp.concatenate([b1, b2], axis=0)                       # [2, H] f32
    w3p = jnp.zeros((hidden_dim, a_pad), jnp.float32).at[:, :action_dim].set(w3)
    w3p = w3p.astype(jnp.bfloat16)
    b3p = jnp.full((1, a_pad), -1e30, jnp.float32).at[:, :action_dim].set(b3)

    params = {"w12": w12, "w3": w3p, "b12": b12, "b3": b3p}
    ref = {"w1": w1, "b1": b1, "w2": w2, "b2": b2, "w3": w3, "b3": b3}
    return params, ref


def reference_forward(observation, latent, ref, observation_dim, latent_dim):
    """Pure-JAX reference mirroring the PyTorch forward (bf16 matmul inputs)."""
    if observation.ndim == 1:
        observation = observation[None, :]
    if latent.ndim == 1:
        latent = latent[None, :]

    def fix(t, target):
        cur = t.shape[-1]
        if cur == target:
            return t
        if cur > target:
            return t[..., :target]
        return jnp.concatenate(
            [t, jnp.zeros((t.shape[0], target - cur), t.dtype)], axis=-1)

    x = jnp.concatenate([fix(observation, observation_dim),
                         fix(latent, latent_dim)], axis=-1)
    bf = lambda t: t.astype(jnp.bfloat16).astype(jnp.float32)
    h1 = jnp.maximum(bf(x) @ bf(ref["w1"]) + ref["b1"], 0.0)
    h2 = jnp.maximum(bf(h1) @ bf(ref["w2"]) + ref["b2"], 0.0)
    logits = bf(h2) @ bf(ref["w3"]) + ref["b3"]
    return jax.nn.softmax(logits, axis=-1)


if __name__ == "__main__":
    observation_dim = 16
    action_dim = 8
    latent_dim = 16
    hidden_dim = 32

    key = jax.random.PRNGKey(0)
    k_params, k_obs, k_lat, k_obs2, k_lat2 = jax.random.split(key, 5)
    params, ref_params = init_params(k_params, observation_dim, latent_dim,
                                     hidden_dim, action_dim)

    # Case 1: small batch, obs narrower than observation_dim (exercises the
    # zero-padding path folded into the fc1 input scratch).
    batch = 4
    observation = jax.random.normal(k_obs, (batch, observation_dim - 2),
                                    jnp.float32)
    latent = jax.random.normal(k_lat, (batch, latent_dim), jnp.float32)

    probs = decoder_forward(observation, latent, params,
                            observation_dim=observation_dim,
                            latent_dim=latent_dim, action_dim=action_dim)
    probs = jax.block_until_ready(probs)
    assert probs.shape == (batch, action_dim)
    assert bool(jnp.all(jnp.isfinite(probs)))
    assert bool(jnp.all(jnp.abs(jnp.sum(probs, axis=-1) - 1.0) < 1e-3))
    ref = reference_forward(observation, latent, ref_params,
                            observation_dim, latent_dim)
    assert bool(jnp.max(jnp.abs(probs - ref)) < 5e-3)

    # Case 2: bigger batch -> 2 grid blocks on the "parallel" batch axis.
    batch2 = 96
    obs2 = jax.random.normal(k_obs2, (batch2, observation_dim), jnp.float32)
    lat2 = jax.random.normal(k_lat2, (batch2, latent_dim), jnp.float32)
    probs2 = jax.block_until_ready(
        decoder_forward(obs2, lat2, params,
                        observation_dim=observation_dim,
                        latent_dim=latent_dim, action_dim=action_dim))
    ref2 = reference_forward(obs2, lat2, ref_params, observation_dim, latent_dim)
    assert probs2.shape == (batch2, action_dim)
    assert bool(jnp.all(jnp.abs(jnp.sum(probs2, axis=-1) - 1.0) < 1e-3))
    assert bool(jnp.max(jnp.abs(probs2 - ref2)) < 5e-3)

    # Case 3: bf16 output path (halved HBM writeback), looser tolerance.
    probs_bf16 = jax.block_until_ready(
        decoder_forward(obs2, lat2, params,
                        observation_dim=observation_dim,
                        latent_dim=latent_dim, action_dim=action_dim,
                        out_dtype=jnp.bfloat16))
    assert probs_bf16.dtype == jnp.bfloat16
    p32 = probs_bf16.astype(jnp.float32)
    assert bool(jnp.all(jnp.abs(jnp.sum(p32, axis=-1) - 1.0) < 2e-2))
    assert bool(jnp.max(jnp.abs(p32 - ref2)) < 1e-2)

    print("KERNEL_OK")
</pallas_src>

<mosaic_0001>
module attributes {stable_mosaic.version = 11 : i64} {
  func.func @_decoder_kernel(%arg0: i32, %arg1: memref<4x14xf32, #tpu.memory_space<vmem>>, %arg2: memref<4x16xf32, #tpu.memory_space<vmem>>, %arg3: memref<64x32xbf16, #tpu.memory_space<vmem>>, %arg4: memref<32x128xbf16, #tpu.memory_space<vmem>>, %arg5: memref<2x32xf32, #tpu.memory_space<vmem>>, %arg6: memref<1x128xf32, #tpu.memory_space<vmem>>, %arg7: memref<4x128xf32, #tpu.memory_space<vmem>>, %arg8: memref<4x32xf32, #tpu.memory_space<vmem>>) attributes {dimension_semantics = [#tpu.dimension_semantics<parallel>], iteration_bounds = array<i64: 1>, scalar_prefetch = 0 : i64, scratch_operands = 1 : i64, tpu.core_type = #tpu.core_type<tc>, window_params = [{transform_indices = @transform_0, window_bounds = array<i64: 4, 14>}, {transform_indices = @transform_1, window_bounds = array<i64: 4, 16>}, {pipeline_mode = #tpu.pipeline_mode<synchronous>, transform_indices = @transform_2, window_bounds = array<i64: 64, 32>}, {pipeline_mode = #tpu.pipeline_mode<synchronous>, transform_indices = @transform_3, window_bounds = array<i64: 32, 128>}, {pipeline_mode = #tpu.pipeline_mode<synchronous>, transform_indices = @transform_4, window_bounds = array<i64: 2, 32>}, {pipeline_mode = #tpu.pipeline_mode<synchronous>, transform_indices = @transform_5, window_bounds = array<i64: 1, 128>}, {transform_indices = @transform_6, window_bounds = array<i64: 4, 128>}]} {
    %cst = arith.constant 0.000000e+00 : f32
    %0 = vector.broadcast %cst : f32 to vector<4x2xf32>
    %c0 = arith.constant 0 : index
    %c14 = arith.constant 14 : index
    %1 = vector.load %arg8[%c0, %c14] : memref<4x32xf32, #tpu.memory_space<vmem>>, vector<4x2xf32>
    tpu.vector_store %arg8[%c0, %c14], %0 {strides = array<i32>} : memref<4x32xf32, #tpu.memory_space<vmem>>, vector<4x2xf32>,
    %c0_0 = arith.constant 0 : index
    %c0_1 = arith.constant 0 : index
    %2 = vector.load %arg1[%c0_0, %c0_1] : memref<4x14xf32, #tpu.memory_space<vmem>>, vector<4x14xf32>
    %c0_2 = arith.constant 0 : index
    %c0_3 = arith.constant 0 : index
    %3 = vector.load %arg8[%c0_2, %c0_3] : memref<4x32xf32, #tpu.memory_space<vmem>>, vector<4x14xf32>
    tpu.vector_store %arg8[%c0_2, %c0_3], %2 {strides = array<i32>} : memref<4x32xf32, #tpu.memory_space<vmem>>, vector<4x14xf32>,
    %c0_4 = arith.constant 0 : index
    %c0_5 = arith.constant 0 : index
    %4 = vector.load %arg2[%c0_4, %c0_5] : memref<4x16xf32, #tpu.memory_space<vmem>>, vector<4x16xf32>
    %c0_6 = arith.constant 0 : index
    %c16 = arith.constant 16 : index
    %5 = vector.load %arg8[%c0_6, %c16] : memref<4x32xf32, #tpu.memory_space<vmem>>, vector<4x16xf32>
    tpu.vector_store %arg8[%c0_6, %c16], %4 {strides = array<i32>} : memref<4x32xf32, #tpu.memory_space<vmem>>, vector<4x16xf32>,
    %c0_7 = arith.constant 0 : index
    %c0_8 = arith.constant 0 : index
    %6 = vector.load %arg8[%c0_7, %c0_8] : memref<4x32xf32, #tpu.memory_space<vmem>>, vector<4x32xf32>
    %7 = arith.truncf %6 : vector<4x32xf32> to vector<4x32xbf16>
    %c0_9 = arith.constant 0 : index
    %c0_10 = arith.constant 0 : index
    %8 = vector.load %arg3[%c0_9, %c0_10] : memref<64x32xbf16, #tpu.memory_space<vmem>>, vector<32x32xbf16>
    %c32 = arith.constant 32 : index
    %c0_11 = arith.constant 0 : index
    %9 = vector.load %arg3[%c32, %c0_11] : memref<64x32xbf16, #tpu.memory_space<vmem>>, vector<32x32xbf16>
    %c0_12 = arith.constant 0 : index
    %c0_13 = arith.constant 0 : index
    %10 = vector.load %arg5[%c0_12, %c0_13] : memref<2x32xf32, #tpu.memory_space<vmem>>, vector<1x32xf32>
    %c1 = arith.constant 1 : index
    %c0_14 = arith.constant 0 : index
    %11 = vector.load %arg5[%c1, %c0_14] : memref<2x32xf32, #tpu.memory_space<vmem>>, vector<1x32xf32>
    %cst_15 = arith.constant dense<0.000000e+00> : vector<4x32xf32>
    %12 = tpu.matmul %7, %8, %cst_15 {dimension_numbers = #tpu.dot_dimension_numbers<[1], [0], [0], [1], [0, 0, 1, 1], [], []>} : vector<4x32xbf16>, vector<32x32xbf16>, vector<4x32xf32> -> vector<4x32xf32>
    %13 = vector.broadcast %10 : vector<1x32xf32> to vector<4x32xf32>
    %14 = arith.addf %12, %13 : vector<4x32xf32>
    %cst_16 = arith.constant 0.000000e+00 : f32
    %15 = vector.broadcast %cst_16 : f32 to vector<4x32xf32>
    %16 = arith.maximumf %14, %15 : vector<4x32xf32>
    %17 = arith.truncf %16 : vector<4x32xf32> to vector<4x32xbf16>
    %cst_17 = arith.constant dense<0.000000e+00> : vector<4x32xf32>
    %18 = tpu.matmul %17, %9, %cst_17 {dimension_numbers = #tpu.dot_dimension_numbers<[1], [0], [0], [1], [0, 0, 1, 1], [], []>} : vector<4x32xbf16>, vector<32x32xbf16>, vector<4x32xf32> -> vector<4x32xf32>
    %19 = vector.broadcast %11 : vector<1x32xf32> to vector<4x32xf32>
    %20 = arith.addf %18, %19 : vector<4x32xf32>
    %cst_18 = arith.constant 0.000000e+00 : f32
    %21 = vector.broadcast %cst_18 : f32 to vector<4x32xf32>
    %22 = arith.maximumf %20, %21 : vector<4x32xf32>
    %23 = arith.truncf %22 : vector<4x32xf32> to vector<4x32xbf16>
    %c0_19 = arith.constant 0 : index
    %c0_20 = arith.constant 0 : index
    %24 = vector.load %arg4[%c0_19, %c0_20] : memref<32x128xbf16, #tpu.memory_space<vmem>>, vector<32x128xbf16>
    %cst_21 = arith.constant dense<0.000000e+00> : vector<4x128xf32>
    %25 = tpu.matmul %23, %24, %cst_21 {dimension_numbers = #tpu.dot_dimension_numbers<[1], [0], [0], [1], [0, 0, 1, 1], [], []>} : vector<4x32xbf16>, vector<32x128xbf16>, vector<4x128xf32> -> vector<4x128xf32>
    %c0_22 = arith.constant 0 : index
    %c0_23 = arith.constant 0 : index
    %26 = vector.load %arg6[%c0_22, %c0_23] : memref<1x128xf32, #tpu.memory_space<vmem>>, vector<1x128xf32>
    %27 = vector.broadcast %26 : vector<1x128xf32> to vector<4x128xf32>
    %28 = arith.addf %25, %27 : vector<4x128xf32>
    %cst_24 = arith.constant dense<0xFF800000> : vector<4xf32>
    %29 = vector.multi_reduction <maximumf>, %28, %cst_24 [1] : vector<4x128xf32> to vector<4xf32>
    %30 = vector.shape_cast %29 : vector<4xf32> to vector<4x1xf32>
    %31 = vector.broadcast %30 : vector<4x1xf32> to vector<4x128xf32>
    %32 = arith.subf %28, %31 : vector<4x128xf32>
    %33 = math.exp %32 : vector<4x128xf32>
    %cst_25 = arith.constant dense<0.000000e+00> : vector<4xf32>
    %34 = vector.multi_reduction <add>, %33, %cst_25 [1] : vector<4x128xf32> to vector<4xf32>
    %35 = vector.shape_cast %34 : vector<4xf32> to vector<4x1xf32>
    %36 = vector.broadcast %35 : vector<4x1xf32> to vector<4x128xf32>
    %37 = arith.divf %33, %36 : vector<4x128xf32>
    %c0_26 = arith.constant 0 : index
    %c0_27 = arith.constant 0 : index
    %38 = vector.load %arg7[%c0_26, %c0_27] : memref<4x128xf32, #tpu.memory_space<vmem>>, vector<4x128xf32>
    tpu.vector_store %arg7[%c0_26, %c0_27], %37 {strides = array<i32>} : memref<4x128xf32, #tpu.memory_space<vmem>>, vector<4x128xf32>,
    return
  }
  func.func @transform_0(%arg0: i32) -> (i32, i32) {
    %c0_i32 = arith.constant 0 : i32
    %c0_i32_0 = arith.constant 0 : i32
    return %arg0, %c0_i32 : i32, i32
  }
  func.func @transform_1(%arg0: i32) -> (i32, i32) {
    %c0_i32 = arith.constant 0 : i32
    %c0_i32_0 = arith.constant 0 : i32
    return %arg0, %c0_i32 : i32, i32
  }
  func.func @transform_2(%arg0: i32) -> (i32, i32) {
    %c0_i32 = arith.constant 0 : i32
    %c0_i32_0 = arith.constant 0 : i32
    %c0_i32_1 = arith.constant 0 : i32
    return %c0_i32, %c0_i32_0 : i32, i32
  }
  func.func @transform_3(%arg0: i32) -> (i32, i32) {
    %c0_i32 = arith.constant 0 : i32
    %c0_i32_0 = arith.constant 0 : i32
    %c0_i32_1 = arith.constant 0 : i32
    return %c0_i32, %c0_i32_0 : i32, i32
  }
  func.func @transform_4(%arg0: i32) -> (i32, i32) {
    %c0_i32 = arith.constant 0 : i32
    %c0_i32_0 = arith.constant 0 : i32
    %c0_i32_1 = arith.constant 0 : i32
    return %c0_i32, %c0_i32_0 : i32, i32
  }
  func.func @transform_5(%arg0: i32) -> (i32, i32) {
    %c0_i32 = arith.constant 0 : i32
    %c0_i32_0 = arith.constant 0 : i32
    %c0_i32_1 = arith.constant 0 : i32
    return %c0_i32, %c0_i32_0 : i32, i32
  }
  func.func @transform_6(%arg0: i32) -> (i32, i32) {
    %c0_i32 = arith.constant 0 : i32
    %c0_i32_0 = arith.constant 0 : i32
    return %arg0, %c0_i32 : i32, i32
  }
}

</mosaic_0001>

<bundles_post_ra>
// kernel: decoder_forward.1
= control target key start
LH: loop header
LB: loop body
LE: loop exit
PB: predicated region body
PF: predicated region fallthrough
CT: control target
= control target key end

     0   :  { %vm25_vm0 = vcmask 126064   ;;  %s348_s23 = smov 16   ;;  %v349_v1 = vmov 0.0   ;;  %vm28_vm1 = vcmask 109568   ;;  %vm350_vm2 = vmmov 0   ;;  %s435_s0 = inlined_call_operand.vmem [shape: f32[4,14], index: 0, kind: input, shape index: {}]   ;;  %s436_s1 = inlined_call_operand.vmem [shape: f32[4,16], index: 1, kind: input, shape index: {}]   ;;  %s437_s2 = inlined_call_operand.vmem [shape: bf16[64,32], index: 2, kind: input, shape index: {}]   ;;  %s438_s3 = inlined_call_operand.vmem [shape: bf16[32,128], index: 3, kind: input, shape index: {}]   ;;  %s439_s4 = inlined_call_operand.vmem [shape: f32[2,32], index: 4, kind: input, shape index: {}]   ;;  %s440_s5 = inlined_call_operand.vmem [shape: f32[1,128], index: 5, kind: input, shape index: {}]   ;;  %s441_s6 = inlined_call_operand.hbm [shape: f32[4,128], index: 6, kind: output, shape index: {}]  }
   0x1   :  { %v30_v0 = vld [vmem:[%s436_s1] sm:$0xf]  ;;  %26 = vst.msk [vmem:[#allocation2] sm:$0xf] %vm25_vm0, %v349_v1  ;;  %286 = vmatprep.subr.bf16.mxu0 %v349_v1  ;;  %294 = vmatprep.subr.bf16.mxu1 %v349_v1  ;;  %v315_v4 = vld [vmem:[%s437_s2 + $0x8] sm:$0xff]  }
   0x2   :  { %32 = vrot.lane.b32.xlu0 %v30_v0, %s348_s23  ;;  %v27_v2 = vld [vmem:[%s435_s0] sm:$0xf]  ;;  %290 = vmatprep.mubr.msk.bf16.mxu0 %vm350_vm2, %v349_v1 }
   0x3   :  { %v314_v3 = vld [vmem:[%s437_s2] sm:$0xff]   ;;  %29 = vst.msk [vmem:[#allocation2] sm:$0xf] %vm28_vm1, %v27_v2  ;;  %298 = vmatprep.mubr.msk.bf16.mxu1 %vm350_vm2, %v349_v1 }
   0x4   :  { %287 = vmatpush3.bf16.msra.mxu0 %v314_v3 }
   0x5   :  { %288 = vmatprep.subr.bf16.mxu0 %v349_v1 }
   0x6   :  { %11 = vsyncpa [#allocation4], 0  ;;  %vm35_vm3 = vcmask 257152   ;;  %vm65_vm4 = vcmask 261120   ;;  %v316_v8 = vld [vmem:[%s437_s2 + $0x10] sm:$0xff]   ;;  %v317_v9 = vld [vmem:[%s437_s2 + $0x18] sm:$0xff]  }
   0x7   :  { %295 = vmatpush3.bf16.msra.mxu1 %v316_v8  ;;  %v318_v10 = vld [vmem:[%s438_s3] sm:$0xff]   ;;  %v319_v19 = vld [vmem:[%s438_s3 + $0x8] sm:$0xff]   ;;  %vm238_vm5 = vcmask 1043456   ;;  %s351_s3 = smov [#allocation3]  }
   0x8   :  { %289 = vmatpush3.bf16.msra.mxu0 %v315_v4  ;;  %296 = vmatprep.subr.bf16.mxu1 %v349_v1  ;;  %v265_v11 = vld [vmem:[%s439_s4] ss:$0 sm:$0xff]  ;;  %v269_v20 = vld [vmem:[%s439_s4 + $0x1] ss:$0 sm:$0xff]  ;;  %s257_s4 = sshll.u32 %s351_s3, 4  ;;  %s258_s4 = int_to_ptr.vmem [resolvable:$true] %s257_s4 }
   0x9   :  { %302 = vmatprep.subr.bf16.mxu0 %v349_v1  ;;  %v273_v28 = vld [vmem:[%s440_s5] ss:$0 sm:$0xff]  ;;  %s324_s5 = scalar_lea.vmem %s258_s4, 64  ;;  %p329_p1 = scmp.lt.s32.totalorder %s258_s4, %s258_s4 }
   0xa   :  { %p325_p0 = scmp.ne.s32.totalorder %s258_s4, %s324_s5  ;;  %p330_p2 = scmp.lt.s32.totalorder %s324_s5, %s324_s5 }
   0xb   :  { %297 = vmatpush3.bf16.msra.mxu1 %v317_v9 }
   0xc   :  { %p331_p3 = por %p330_p2, %p329_p1 }
   0xe   :  { %p332_p4 = pnand %p331_p3, %p325_p0 }
  0x74   :  { %v33_v5 = vpop.permute.xlu0 %32 }
  0x75   :  { %36 = vst.msk [vmem:[#allocation2] sm:$0xf] %vm35_vm3, %v33_v5 }
  0x7c   :  { %v37_v6 = vld [vmem:[#allocation2] sm:$0xf] }
  0x7d   :  { %v38_v7 = vpack.c.bf16 %v37_v6, %v37_v6 }
  0x7f   :  { %291 = vmatmul.mubr.msk.bf16.vlgmr.msra.gmra.mrb[0].mxu0 %vm65_vm4, %v38_v7 }
  0x80   :  { %306 = vmatprep.mubr.msk.bf16.mxu0 %vm350_vm2, %v349_v1  ;;  %303 = vmatpush3.bf16.msra.mxu0 %v318_v10 }
  0x81   :  { %304 = vmatprep.subr.bf16.mxu0 %v349_v1 }
  0x84   :  { %305 = vmatpush3.bf16.msra.mxu0 %v319_v19 }
 0x152   :  { %v103_v12 = vpop.f32.mrb[0].mxu0 }
 0x153   :  { %v104_v13 = vadd.f32 %v265_v11, %v103_v12  ;;  %v292_v14 = vpop.f32.mrb[1].mxu0 }
 0x154   :  { %v106_v15 = vpop.f32.mrb[2].mxu0 }
 0x155   :  { %v109_v16 = vmax.f32 %v104_v13, 0.0  ;;  %v293_v17 = vpop.f32.mrb[3].mxu0 }
 0x157   :  { %v110_v18 = vpack.c.bf16 %v109_v16, %v109_v16 }
 0x159   :  { %299 = vmatmul.mubr.msk.bf16.vlgmr.msra.gmra.mrb[0].mxu1 %vm65_vm4, %v110_v18 }
 0x22c   :  { %v164_v21 = vpop.f32.mrb[0].mxu1 }
 0x22d   :  { %v165_v22 = vadd.f32 %v269_v20, %v164_v21  ;;  %v300_v23 = vpop.f32.mrb[1].mxu1 }
 0x22e   :  { %v167_v24 = vpop.f32.mrb[2].mxu1 }
 0x22f   :  { %v170_v25 = vmax.f32 %v165_v22, 0.0  ;;  %v301_v26 = vpop.f32.mrb[3].mxu1 }
 0x231   :  { %v171_v27 = vpack.c.bf16 %v170_v25, %v170_v25 }
 0x233   :  { %307 = vmatmul.mubr.msk.bf16.vlgmr.msra.gmra.mrb[4].mxu0 %vm65_vm4, %v171_v27 }
 0x306   :  { %v232_v29 = vpop.f32.mrb[4].mxu0 }
 0x307   :  { %v233_v30 = vadd.f32 %v273_v28, %v232_v29  ;;  %v308_v31 = vpop.f32.mrb[5].mxu0 }
 0x308   :  { %v235_v32 = vpop.f32.mrb[6].mxu0 }
 0x309   :  { %v309_v33 = vpop.f32.mrb[7].mxu0  ;;  %v239_v34 = vsel %vm238_vm5, %v233_v30, -inf }
 0x30a   :  { %240 = vmax.xlane.f32.xlu0 %v239_v34 }
 0x397   :  { %v241_v35 = vpop.xlane.xlu0 %240 }
 0x398   :  { %v242_v36 = vsub.f32 %v233_v30, %v241_v35 }
 0x39a   :  { %v243_v37 = vmul.f32 1.442695, %v242_v36 }
 0x39c   :  { %320 = vpow2.f32 %v243_v37 }
 0x3a6   :  { %v321_v38 = vpop.eup %320 }
 0x3a7   :  { %v245_v39 = vsel %vm238_vm5, %v321_v38, 0.0 }
 0x3a8   :  { %246 = vadd.xlane.f32.xlu1 %v245_v39 }
 0x435   :  { %v247_v40 = vpop.xlane.xlu1 %246 }
 0x436   :  { %322 = vrcp.f32 %v247_v40 }
 0x440   :  { %v323_v41 = vpop.eup %322 }
 0x441   :  { %v249_v42 = vmul.f32 %v323_v41, %v321_v38 }
 0x443   :  { %250 = vst [vmem:[#allocation3] sm:$0xf] %v249_v42 }
 0x444   :  { %335 = shalt.err (!%p332_p4)
}
 0x445   :  { %s336_s19 = scalar_lea.hbm %s441_s6, 64 }
 0x446   :  { %p337_p5 = scmp.ne.s32.totalorder %s441_s6, %s336_s19  ;;  %p340_p6 = scmp.lt.u32.totalorder %s336_s19, %s441_s6 }
 0x448   :  { %p342_p7 = pnand %p340_p6, %p337_p5 }
 0x44a   :  { %345 = shalt.err (!%p342_p7)
}
 0x44b   :  { %260 = dma.vmem_to_hbm [thread:$0]  %s258_s4, 64, %s441_s6, [#allocation4]  }
 0x44c   :  { %346 = dma.done.wait [#allocation4], 64  }
 0x44d   :  { %347 = vsyncadd [#allocation4], 4294967232 }
 0x44e   :  { %264 = vsyncpa [#allocation4], 1 }

</bundles_post_ra>
